<compile_context>
chip_gen: v7x
topology: tpu7x:2x2x1
jax: 0.10.0
libtpu: 0.0.40
codegen_flags: <defaults>
</compile_context>

<pallas_src>
import functools

import jax
import jax.numpy as jnp
import numpy as np
from jax import lax
from jax.experimental import pallas as pl
from jax.experimental.pallas import tpu as pltpu


def _detect_level_kernel(x_ref, w_ref, cst_ref, *out_refs, stride, nx, with_conv):
    """One (Cout, tm) output block: 1x1 conv + sigmoid + box decode."""
    if with_conv:
        conv_ref, y_ref = out_refs
    else:
        (y_ref,) = out_refs

    tm = x_ref.shape[-1]

    # packed per-output-channel constants (tiny, resident in VMEM), f32
    bias = cst_ref[:, 0:1]      # (Cout, 1) conv bias
    anc = cst_ref[:, 1:2]       # anchor scale (o==2 -> aw, o==3 -> ah, else 1)
    xym = cst_ref[:, 2:3]       # 1.0 on xy columns (o < 2)
    whm = cst_ref[:, 3:4]       # 1.0 on wh columns (o == 2, 3)
    sel_x = cst_ref[:, 4:5]     # 1.0 on o == 0 (gets +gx)
    sel_y = cst_ref[:, 5:6]     # 1.0 on o == 1 (gets +gy)

    # 1x1 conv == (Cout, Cin) @ (Cin, tm) matmul, f32 accumulate on the MXU.
    z = jnp.dot(w_ref[...], x_ref[...],
                preferred_element_type=jnp.float32) + bias
    if with_conv:
        conv_ref[...] = z

    s = jax.nn.sigmoid(z)

    # Per-column spatial position computed IN-KERNEL.  Batch is grid axis 0,
    # so the only decode left is p -> (gy, gx) with p < hw (small).  The f32
    # reciprocal-multiply division below is verified exhaustively on the host
    # at trace time (_check_grid_decode).
    j = lax.broadcasted_iota(jnp.int32, (1, tm), 1)
    p = (pl.program_id(1) * tm + j).astype(jnp.float32)            # (1, tm)
    gy = ((p + 0.5) * (1.0 / nx)).astype(jnp.int32).astype(jnp.float32)
    gx = p - gy * nx
    grid_off = sel_x * gx + sel_y * gy                             # (Cout, tm)

    # box decode (f32), fused; single blend instead of nested selects
    s2 = s * 2.0
    xy = (s2 - 0.5 + grid_off) * stride
    wh = (s2 * s2) * anc
    y_ref[...] = s + xym * (xy - s) + whm * (wh - s)


def _choose_tm(hw, cap=1024, want_blocks=1):
    """Largest lane-multiple divisor of hw (<= cap); full extent otherwise."""
    if hw % 128 != 0:
        return hw                       # full-extent block (exempt from rule)
    best = 128
    t = 128
    while t <= hw:
        if hw % t == 0 and t <= cap and hw // t >= want_blocks:
            best = t
        t += 128
    return best


def _check_grid_decode(hw, nx):
    """Exhaustively verify the in-kernel f32 decode p -> p // nx at trace time."""
    assert hw < (1 << 24), "spatial extent exceeds exact f32 int range"
    p = np.arange(hw, dtype=np.float32)
    recip = np.float32(1.0 / float(nx))
    gy = ((p + np.float32(0.5)) * recip).astype(np.int32)
    if not np.array_equal(gy, (np.arange(hw) // nx).astype(np.int32)):
        raise ValueError(f"f32 grid decode not exact for hw={hw}, nx={nx}")


def _build_constants(bias, anchors_l, na, no):
    """Pack per-output-channel constants into one (Cout, 6) f32 block."""
    cout = na * no
    o = np.arange(cout) % no
    a_idx = np.arange(cout) // no
    cst = np.zeros((cout, 6), np.float32)
    cst[:, 0] = np.asarray(bias, np.float32).reshape(cout)
    cst[:, 1] = 1.0
    cst[o == 2, 1] = anchors_l[a_idx[o == 2], 0]
    cst[o == 3, 1] = anchors_l[a_idx[o == 3], 1]
    cst[:, 2] = (o < 2)
    cst[:, 3] = (o == 2) | (o == 3)
    cst[:, 4] = (o == 0)
    cst[:, 5] = (o == 1)
    return cst


def detect_level(x_nchw, w, b, anchors_l, stride, nc, na, *,
                 with_conv=True, input_dtype=jnp.bfloat16,
                 tm_cap=1024, input_buffers=3):
    """One detection level.

    Returns (x_out (bs,na,ny,nx,no) or None, z_out (bs, na*ny*nx, no)).
    """
    bs, cin, ny, nx = x_nchw.shape
    no = nc + 5
    cout = na * no
    hw = ny * nx

    tm = _choose_tm(hw, cap=tm_cap, want_blocks=2 if bs == 1 else 1)
    assert hw % tm == 0
    n_blocks = hw // tm
    _check_grid_decode(hw, nx)

    # ---- glue: free reshape only (no transpose, no pad) -------------------
    x3 = x_nchw.reshape(bs, cin, hw).astype(input_dtype)
    w_mat = jnp.asarray(w, input_dtype).reshape(cout, cin)
    cst = jnp.asarray(_build_constants(b, np.asarray(anchors_l, np.float32)
                                       .reshape(na, 2), na, no))

    kernel = functools.partial(_detect_level_kernel, stride=float(stride),
                               nx=nx, with_conv=with_conv)

    # activation stream: squeezed batch dim; optional deeper pipelining
    use_buffered = (input_buffers not in (None, 2)) and (n_blocks >= input_buffers)
    x_spec_kwargs = {"pipeline_mode": pl.Buffered(input_buffers)} if use_buffered else {}
    in_specs = [
        pl.BlockSpec((None, cin, tm), lambda bb, i: (bb, 0, i), **x_spec_kwargs),
        pl.BlockSpec((cout, cin), lambda bb, i: (0, 0)),     # weights (resident)
        pl.BlockSpec((cout, 6), lambda bb, i: (0, 0)),       # packed constants
    ]

    y_shape = jax.ShapeDtypeStruct((bs, cout, hw), jnp.float32)
    out_block = pl.BlockSpec((None, cout, tm), lambda bb, i: (bb, 0, i))
    if with_conv:
        out_shape = (y_shape, y_shape)
        out_specs = (out_block, out_block)
    else:
        out_shape = y_shape
        out_specs = out_block

    # scoped-VMEM budget from the actual tile footprint (+ headroom)
    in_item = jnp.dtype(input_dtype).itemsize
    n_in_bufs = input_buffers if use_buffered else 2
    vmem_need = (n_in_bufs * cin * tm * in_item
                 + (2 if with_conv else 1) * 2 * cout * tm * 4
                 + 2 * (cout * max(cin, 128) * in_item + cout * 128 * 4))
    vmem_limit = int(min(96 << 20, max(32 << 20, 2 * vmem_need)))

    outs = pl.pallas_call(
        kernel,
        out_shape=out_shape,
        grid=(bs, n_blocks),
        in_specs=in_specs,
        out_specs=out_specs,
        compiler_params=pltpu.CompilerParams(
            dimension_semantics=("parallel", "parallel"),
            vmem_limit_bytes=vmem_limit),
    )(x3, w_mat, cst)

    if with_conv:
        conv_cm, y_cm = outs
    else:
        conv_cm, y_cm = None, outs

    # ---- glue: (bs, Cout, hw) rows c=a*no+o -> (bs, na, hw, no) ------------
    def to_bapo(t):
        return t.reshape(bs, na, no, hw).transpose(0, 1, 3, 2)

    z_out = to_bapo(y_cm).reshape(bs, na * hw, no)
    x_out = to_bapo(conv_cm).reshape(bs, na, ny, nx, no) if with_conv else None
    return x_out, z_out


def detect_forward(xs, weights, biases, anchors, strides, nc, *,
                   with_x=True, input_dtype=jnp.bfloat16, tm_cap=1024):
    """Inference forward of Detect: returns (cat(z, axis=1), x list or None)."""
    na = len(anchors[0]) // 2
    x_outs, zs = [], []
    for i, x in enumerate(xs):
        x_out, z = detect_level(
            x, weights[i], biases[i],
            np.asarray(anchors[i], np.float32).reshape(na, 2),
            strides[i], nc, na,
            with_conv=with_x, input_dtype=input_dtype, tm_cap=tm_cap)
        x_outs.append(x_out)
        zs.append(z)
    z_cat = jnp.concatenate(zs, axis=1)
    return (z_cat, x_outs) if with_x else (z_cat, None)


def reference(xs, weights, biases, anchors, strides, nc):
    """Pure-JAX reference mirroring the PyTorch forward (inference mode)."""
    na = len(anchors[0]) // 2
    no = nc + 5
    z_all, x_all = [], []
    for i, x in enumerate(xs):
        bs, cin, ny, nx = x.shape
        W = jnp.asarray(weights[i], jnp.float32)
        b = jnp.asarray(biases[i], jnp.float32)
        z = jnp.einsum('bkyx,ck->bcyx', jnp.asarray(x, jnp.float32), W,
                       precision=jax.lax.Precision.HIGHEST)
        z = z + b[None, :, None, None]
        xi = (z.reshape(bs, na, no, ny * nx)
               .transpose(0, 1, 3, 2)
               .reshape(bs, na, ny, nx, no))
        x_all.append(xi)
        y = jax.nn.sigmoid(xi)
        yv, xv = jnp.meshgrid(jnp.arange(ny), jnp.arange(nx), indexing='ij')
        grid = jnp.stack((xv, yv), 2).reshape(1, 1, ny, nx, 2).astype(jnp.float32)
        anchor_grid = (jnp.asarray(anchors[i], jnp.float32)
                       .reshape(na, 2).reshape(1, na, 1, 1, 2))
        xy = (y[..., 0:2] * 2.0 - 0.5 + grid) * strides[i]
        wh = (y[..., 2:4] * 2.0) ** 2 * anchor_grid
        y = jnp.concatenate([xy, wh, y[..., 4:]], axis=-1)
        z_all.append(y.reshape(bs, -1, no))
    return jnp.concatenate(z_all, 1), x_all


if __name__ == "__main__":
    nc = 13                                              # num classes
    no = nc + 5
    anchors = ((10, 13, 16, 30, 33, 23),                 # nl=2 levels, na=3
               (30, 61, 62, 45, 59, 119))
    ch = (4, 8)                                          # input channels per level
    strides = (8.0, 16.0)
    na = len(anchors[0]) // 2
    cout = na * no

    key = jax.random.PRNGKey(0)
    k_x0, k_x1, k_w0, k_w1, k_b0, k_b1 = jax.random.split(key, 6)

    # small deterministic example inputs (NCHW, as in PyTorch)
    xs = [jax.random.normal(k_x0, (2, ch[0], 16, 16), jnp.float32),
          jax.random.normal(k_x1, (2, ch[1], 8, 8), jnp.float32)]

    # deterministic 1x1 conv params: W (Cout, Cin), b (Cout,)
    weights = [0.1 * jax.random.normal(k_w0, (cout, ch[0]), jnp.float32),
               0.1 * jax.random.normal(k_w1, (cout, ch[1]), jnp.float32)]
    biases = [0.05 * jax.random.normal(k_b0, (cout,), jnp.float32),
              0.05 * jax.random.normal(k_b1, (cout,), jnp.float32)]

    z_ref, x_ref = reference(xs, weights, biases, anchors, strides, nc)
    z_ref = jax.block_until_ready(z_ref)

    # 1) full-precision path, module semantics: returns (z, x list)
    z32, x32 = detect_forward(xs, weights, biases, anchors, strides, nc,
                              with_x=True, input_dtype=jnp.float32)
    z32 = jax.block_until_ready(z32)
    x32 = [jax.block_until_ready(t) for t in x32]
    assert z32.shape == (2, na * (16 * 16 + 8 * 8), no)
    for xo, xr in zip(x32, x_ref):
        np.testing.assert_allclose(np.asarray(xo), np.asarray(xr),
                                   rtol=5e-3, atol=3e-2)
    np.testing.assert_allclose(np.asarray(z32), np.asarray(z_ref),
                               rtol=5e-3, atol=3e-2)

    # 2) fast inference path: bf16 input DMA (v6e/v7x datapath), z-only output
    #    (upstream network would hand us bf16 activations directly)
    xs_bf16 = [x.astype(jnp.bfloat16) for x in xs]
    z16, x16 = detect_forward(xs_bf16, weights, biases, anchors, strides, nc,
                              with_x=False)
    z16 = jax.block_until_ready(z16)
    assert x16 is None
    assert z16.shape == z_ref.shape
    np.testing.assert_allclose(np.asarray(z16), np.asarray(z_ref),
                               rtol=2e-2, atol=2e-1)

    print("KERNEL_OK")
</pallas_src>

<mosaic_0001>
module attributes {stable_mosaic.version = 11 : i64} {
  func.func @_detect_level_kernel(%arg0: i32, %arg1: i32, %arg2: memref<1x4x256xf32, #tpu.memory_space<vmem>>, %arg3: memref<54x4xf32, #tpu.memory_space<vmem>>, %arg4: memref<54x6xf32, #tpu.memory_space<vmem>>, %arg5: memref<1x54x256xf32, #tpu.memory_space<vmem>>, %arg6: memref<1x54x256xf32, #tpu.memory_space<vmem>>) attributes {dimension_semantics = [#tpu.dimension_semantics<parallel>, #tpu.dimension_semantics<parallel>], iteration_bounds = array<i64: 2, 1>, scalar_prefetch = 0 : i64, scratch_operands = 0 : i64, tpu.core_type = #tpu.core_type<tc>, window_params = [{transform_indices = @transform_0, window_bounds = array<i64: 1, 4, 256>}, {pipeline_mode = #tpu.pipeline_mode<synchronous>, transform_indices = @transform_1, window_bounds = array<i64: 54, 4>}, {pipeline_mode = #tpu.pipeline_mode<synchronous>, transform_indices = @transform_2, window_bounds = array<i64: 54, 6>}, {transform_indices = @transform_3, window_bounds = array<i64: 1, 54, 256>}, {transform_indices = @transform_4, window_bounds = array<i64: 1, 54, 256>}]} {
    %c0 = arith.constant 0 : index
    %c0_0 = arith.constant 0 : index
    %0 = vector.load %arg4[%c0, %c0_0] : memref<54x6xf32, #tpu.memory_space<vmem>>, vector<54x1xf32>
    %c0_1 = arith.constant 0 : index
    %c1 = arith.constant 1 : index
    %1 = vector.load %arg4[%c0_1, %c1] : memref<54x6xf32, #tpu.memory_space<vmem>>, vector<54x1xf32>
    %c0_2 = arith.constant 0 : index
    %c2 = arith.constant 2 : index
    %2 = vector.load %arg4[%c0_2, %c2] : memref<54x6xf32, #tpu.memory_space<vmem>>, vector<54x1xf32>
    %c0_3 = arith.constant 0 : index
    %c3 = arith.constant 3 : index
    %3 = vector.load %arg4[%c0_3, %c3] : memref<54x6xf32, #tpu.memory_space<vmem>>, vector<54x1xf32>
    %c0_4 = arith.constant 0 : index
    %c4 = arith.constant 4 : index
    %4 = vector.load %arg4[%c0_4, %c4] : memref<54x6xf32, #tpu.memory_space<vmem>>, vector<54x1xf32>
    %c0_5 = arith.constant 0 : index
    %c5 = arith.constant 5 : index
    %5 = vector.load %arg4[%c0_5, %c5] : memref<54x6xf32, #tpu.memory_space<vmem>>, vector<54x1xf32>
    %c0_6 = arith.constant 0 : index
    %c0_7 = arith.constant 0 : index
    %6 = vector.load %arg3[%c0_6, %c0_7] : memref<54x4xf32, #tpu.memory_space<vmem>>, vector<54x4xf32>
    %c0_8 = arith.constant 0 : index
    %c0_9 = arith.constant 0 : index
    %c0_10 = arith.constant 0 : index
    %7 = vector.load %arg2[%c0_8, %c0_9, %c0_10] : memref<1x4x256xf32, #tpu.memory_space<vmem>>, vector<1x4x256xf32>
    %8 = vector.shape_cast %7 : vector<1x4x256xf32> to vector<4x256xf32>
    %cst = arith.constant dense<0.000000e+00> : vector<54x256xf32>
    %9 = tpu.matmul %6, %8, %cst {dimension_numbers = #tpu.dot_dimension_numbers<[1], [0], [0], [1], [0, 0, 1, 1], [], []>} : vector<54x4xf32>, vector<4x256xf32>, vector<54x256xf32> -> vector<54x256xf32>
    %10 = vector.broadcast %0 : vector<54x1xf32> to vector<54x256xf32>
    %11 = arith.addf %9, %10 : vector<54x256xf32>
    %c0_11 = arith.constant 0 : index
    %c0_12 = arith.constant 0 : index
    %c0_13 = arith.constant 0 : index
    %12 = vector.load %arg5[%c0_11, %c0_12, %c0_13] : memref<1x54x256xf32, #tpu.memory_space<vmem>>, vector<1x54x256xf32>
    %13 = vector.shape_cast %12 : vector<1x54x256xf32> to vector<54x256xf32>
    %14 = vector.shape_cast %11 : vector<54x256xf32> to vector<1x54x256xf32>
    tpu.vector_store %arg5[%c0_11, %c0_12, %c0_13], %14 {strides = array<i32>} : memref<1x54x256xf32, #tpu.memory_space<vmem>>, vector<1x54x256xf32>,
    %15 = arith.negf %11 : vector<54x256xf32>
    %16 = math.exp %15 : vector<54x256xf32>
    %cst_14 = arith.constant 1.000000e+00 : f32
    %17 = vector.broadcast %cst_14 : f32 to vector<54x256xf32>
    %18 = arith.addf %17, %16 : vector<54x256xf32>
    %19 = arith.divf %17, %18 : vector<54x256xf32>
    %20 = tpu.iota {dimensions = array<i32: 1>} : vector<1x256xi32>
    %c256_i32 = arith.constant 256 : i32
    %21 = arith.muli %arg1, %c256_i32 : i32
    %22 = vector.broadcast %21 : i32 to vector<1x256xi32>
    %23 = arith.addi %22, %20 : vector<1x256xi32>
    %24 = arith.sitofp %23 : vector<1x256xi32> to vector<1x256xf32>
    %cst_15 = arith.constant 5.000000e-01 : f32
    %25 = vector.broadcast %cst_15 : f32 to vector<1x256xf32>
    %26 = arith.addf %24, %25 : vector<1x256xf32>
    %cst_16 = arith.constant 6.250000e-02 : f32
    %27 = vector.broadcast %cst_16 : f32 to vector<1x256xf32>
    %28 = arith.mulf %26, %27 : vector<1x256xf32>
    %29 = arith.fptosi %28 : vector<1x256xf32> to vector<1x256xi32>
    %30 = arith.sitofp %29 : vector<1x256xi32> to vector<1x256xf32>
    %cst_17 = arith.constant 1.600000e+01 : f32
    %31 = vector.broadcast %cst_17 : f32 to vector<1x256xf32>
    %32 = arith.mulf %30, %31 : vector<1x256xf32>
    %33 = arith.subf %24, %32 : vector<1x256xf32>
    %34 = vector.broadcast %4 : vector<54x1xf32> to vector<54x256xf32>
    %35 = vector.broadcast %33 : vector<1x256xf32> to vector<54x256xf32>
    %36 = arith.mulf %34, %35 : vector<54x256xf32>
    %37 = vector.broadcast %5 : vector<54x1xf32> to vector<54x256xf32>
    %38 = vector.broadcast %30 : vector<1x256xf32> to vector<54x256xf32>
    %39 = arith.mulf %37, %38 : vector<54x256xf32>
    %40 = arith.addf %36, %39 : vector<54x256xf32>
    %cst_18 = arith.constant 2.000000e+00 : f32
    %41 = vector.broadcast %cst_18 : f32 to vector<54x256xf32>
    %42 = arith.mulf %19, %41 : vector<54x256xf32>
    %cst_19 = arith.constant 5.000000e-01 : f32
    %43 = vector.broadcast %cst_19 : f32 to vector<54x256xf32>
    %44 = arith.subf %42, %43 : vector<54x256xf32>
    %45 = arith.addf %44, %40 : vector<54x256xf32>
    %cst_20 = arith.constant 8.000000e+00 : f32
    %46 = vector.broadcast %cst_20 : f32 to vector<54x256xf32>
    %47 = arith.mulf %45, %46 : vector<54x256xf32>
    %48 = arith.mulf %42, %42 : vector<54x256xf32>
    %49 = vector.broadcast %1 : vector<54x1xf32> to vector<54x256xf32>
    %50 = arith.mulf %48, %49 : vector<54x256xf32>
    %51 = arith.subf %47, %19 : vector<54x256xf32>
    %52 = vector.broadcast %2 : vector<54x1xf32> to vector<54x256xf32>
    %53 = arith.mulf %52, %51 : vector<54x256xf32>
    %54 = arith.addf %19, %53 : vector<54x256xf32>
    %55 = arith.subf %50, %19 : vector<54x256xf32>
    %56 = vector.broadcast %3 : vector<54x1xf32> to vector<54x256xf32>
    %57 = arith.mulf %56, %55 : vector<54x256xf32>
    %58 = arith.addf %54, %57 : vector<54x256xf32>
    %c0_21 = arith.constant 0 : index
    %c0_22 = arith.constant 0 : index
    %c0_23 = arith.constant 0 : index
    %59 = vector.load %arg6[%c0_21, %c0_22, %c0_23] : memref<1x54x256xf32, #tpu.memory_space<vmem>>, vector<1x54x256xf32>
    %60 = vector.shape_cast %59 : vector<1x54x256xf32> to vector<54x256xf32>
    %61 = vector.shape_cast %58 : vector<54x256xf32> to vector<1x54x256xf32>
    tpu.vector_store %arg6[%c0_21, %c0_22, %c0_23], %61 {strides = array<i32>} : memref<1x54x256xf32, #tpu.memory_space<vmem>>, vector<1x54x256xf32>,
    return
  }
  func.func @transform_0(%arg0: i32, %arg1: i32) -> (i32, i32, i32) {
    %c0_i32 = arith.constant 0 : i32
    %c0_i32_0 = arith.constant 0 : i32
    return %arg0, %c0_i32, %arg1 : i32, i32, i32
  }
  func.func @transform_1(%arg0: i32, %arg1: i32) -> (i32, i32) {
    %c0_i32 = arith.constant 0 : i32
    %c0_i32_0 = arith.constant 0 : i32
    %c0_i32_1 = arith.constant 0 : i32
    return %c0_i32, %c0_i32_0 : i32, i32
  }
  func.func @transform_2(%arg0: i32, %arg1: i32) -> (i32, i32) {
    %c0_i32 = arith.constant 0 : i32
    %c0_i32_0 = arith.constant 0 : i32
    %c0_i32_1 = arith.constant 0 : i32
    return %c0_i32, %c0_i32_0 : i32, i32
  }
  func.func @transform_3(%arg0: i32, %arg1: i32) -> (i32, i32, i32) {
    %c0_i32 = arith.constant 0 : i32
    %c0_i32_0 = arith.constant 0 : i32
    return %arg0, %c0_i32, %arg1 : i32, i32, i32
  }
  func.func @transform_4(%arg0: i32, %arg1: i32) -> (i32, i32, i32) {
    %c0_i32 = arith.constant 0 : i32
    %c0_i32_0 = arith.constant 0 : i32
    return %arg0, %c0_i32, %arg1 : i32, i32, i32
  }
}

</mosaic_0001>

<bundles_post_ra>
// kernel: tpu_custom_call.1
= control target key start
LH: loop header
LB: loop body
LE: loop exit
PB: predicated region body
PF: predicated region fallthrough
CT: control target
= control target key end

     0   :  { %s1279_s15 = smov 0   ;;  %s1281_s16 = smov 0   ;;  %s1821_s0 = inlined_call_operand.vmem [shape: f32[2,4,256], index: 0, kind: input, shape index: {}]   ;;  %s1822_s1 = inlined_call_operand.vmem [shape: f32[54,4], index: 1, kind: input, shape index: {}]   ;;  %s1823_s2 = inlined_call_operand.vmem [shape: f32[54,6], index: 2, kind: input, shape index: {}]   ;;  %s1824_s3 = inlined_call_operand.vmem [shape: f32[2,54,256], index: 3, kind: output, shape index: {0}]   ;;  %s1825_s4 = inlined_call_operand.vmem [shape: f32[2,54,256], index: 4, kind: output, shape index: {1}]  }
   0x1   :  { %s1283_s17 = smov 0  }
   0x2 LB: > { %s27_s18 = sadd.s32 1, %s1241_s16  ;;  %p1071_p0 = scmp.ge.s32.totalorder %s1245_s17, 1  ;;  %s1245_s17 = sphi %s1283_s17, %s15_s17   ;;  %s1241_s16 = sphi %s1281_s16, %s1840_s16   ;;  %s1237_s15 = sphi %s1279_s15, %s1839_s15  }
   0x3   : > { %p29_p1 = scmp.ge.s32.totalorder %s27_s18, 2  ;;  %p188_p2 = scmp.lt.s32.totalorder %s1245_s17, 3 }
   0x5   : > { %s1842_s18 = smov (%p29_p1, %s27_s18), 0  ;;  %p189_p3 = pnand %p1071_p0, %p188_p2 }
   0x7   : > { %192 = sbr.rel (%p189_p3) target bundleno = 314 (0x13a), region = 32 }
   0xe   : > { %p232_p4 = scmp.lt.s32.totalorder %s1237_s15, 1  ;;  %v1247_v0 = vmov 0.0   ;;  %v1248_v1 = vmov 0   ;;  %v1302_v2 = vld [vmem:[%s1823_s2 + $0x10] sm:$0xff]  ;;  %v1308_v3 = vld [vmem:[%s1823_s2] sm:$0xff]  ;;  %v1314_v4 = vld [vmem:[%s1823_s2 + $0x18] sm:$0xff]  ;;  %v545_v29 = vlaneseq }
   0xf   : > { %404 = vmatprep.mubr.f32.mxu0 %v1247_v0  ;;  %428 = vmatprep.mubr.f32.mxu1 %v1247_v0  ;;  %v1323_v5 = vld [vmem:[%s1823_s2 + $0x8] sm:$0xff]  ;;  %vm335_vm0 = vcmask 1043456   ;;  %v268_v8 = vld [vmem:[%s1822_s1] sm:$0xff]  ;;  %vm313_vm1 = vcmask 31744   ;;  %v267_v14 = vld [vmem:[%s1823_s2 + $0x30] sm:$0x3f] }
  0x10   : > { %s1844_s15 = smov (!%p232_p4, %s1237_s15), 1  ;;  %1155 = vset.pattern.permute.xlu1 %v1248_v1  ;;  %1154 = vset.pattern.permute.xlu0 %v1248_v1  ;;  %v272_v9 = vld [vmem:[%s1822_s1 + $0x20] sm:$0xff]  ;;  %v1336_v10 = vld [vmem:[%s1823_s2 + $0x28] sm:$0xff]  ;;  %v270_v15 = vld [vmem:[%s1822_s1 + $0x10] sm:$0xff]  ;;  %v1249_v17 = vmov 4   ;;  %v1250_v19 = vmov 5  }
  0x11   : > { %288 = vperm.xlu1 %1155, %v1302_v2   ;;  %s1115_s23 = sshll.u32 %s1844_s15, 3  ;;  %278 = vperm.xlu0 %1154, %v1308_v3   ;;  %v1341_v11 = vld [vmem:[%s1823_s2 + $0x20] sm:$0xff]  ;;  %v269_v12 = vld [vmem:[%s1822_s1 + $0x8] sm:$0xff]  ;;  %v274_v16 = vld [vmem:[%s1822_s1 + $0x30] sm:$0x3f]  ;;  %v1251_v20 = vmov 1  }
  0x12   : > { %s239_s28 = scalar_lea.vmem %s1821_s0, %s1115_s23  ;;  %v273_v13 = vld [vmem:[%s1822_s1 + $0x28] sm:$0xff]  ;;  %v271_v18 = vld [vmem:[%s1822_s1 + $0x18] sm:$0xff]  ;;  %v1252_v21 = vmov 2   ;;  %v1253_v22 = vmov 3   ;;  %v546_v31 = vand.u32 127, %v545_v29  ;;  %s1118_s29 = smul.u32 112, %s1844_s15 }
  0x13   : > { %v275_v6 = vld [vmem:[%s239_s28] sm:$0xff] }
  0x14   : > { %v312_v7 = vcombine.high %v275_v6, %v275_v6  ;;  %v547_v34 = vadd.s32 128, %v546_v31  ;;  %v552_v35 = vcvt.s32.f32 %v546_v31  ;;  %s1443_s6 = scalar_lea.vmem %s1824_s3, %s1118_s29  ;;  %s1752_s9 = scalar_lea.vmem %s1825_s4, %s1118_s29 }
  0x15   : > { %293 = vperm.xlu1 %1155, %v1314_v4   ;;  %283 = vperm.xlu0 %1154, %v1323_v5  }
  0x16   : > { %1076 = vmatprep.subr.msk.mxu0 %vm335_vm0, %v312_v7  ;;  %1116 = vmatprep.subr.msk.mxu1 %vm335_vm0, %v312_v7  ;;  %v553_v37 = vcvt.s32.f32 %v547_v34  ;;  %v554_v39 = vadd.f32 0.5, %v552_v35 }
  0x17   : > { %1077 = vmatpush1.msk.msra.mxu0 %vm335_vm0, %v275_v6  ;;  %1117 = vmatpush1.msk.msra.mxu1 %vm335_vm0, %v275_v6 }
  0x18   : > { %1078 = vmatmul.mubr.msk.f32.vlgmr.msra.gmra.mrb[0].mxu0 %vm313_vm1, %v268_v8  ;;  %1082 = vmatmul.mubr.msk.f32.vlgmr.msra.gmra.mrb[0].mxu1 %vm313_vm1, %v272_v9  ;;  %v555_v40 = vadd.f32 0.5, %v553_v37  ;;  %v556_v42 = vmul.f32 0.0625, %v554_v39 }
  0x19   : > { %410 = vmatprep.mubr.f32.mxu0 %v1247_v0  ;;  %434 = vmatprep.mubr.f32.mxu1 %v1247_v0 }
  0x1a   : > { %303 = vperm.xlu1 %1155, %v1336_v10   ;;  %298 = vperm.xlu0 %1154, %v1341_v11   ;;  %v557_v44 = vmul.f32 0.0625, %v555_v40  ;;  %v1119_v45 = vtrunc.f32 %v556_v42 }
  0x1c   : > { %1079 = vmatmul.mubr.msk.f32.gmra.mrb[2].mxu0 %vm313_vm1, %v269_v12  ;;  %1083 = vmatmul.mubr.msk.f32.gmra.mrb[2].mxu1 %vm313_vm1, %v273_v13  ;;  %v1121_v47 = vtrunc.f32 %v557_v44  ;;  %v1120_v49 = vcvt.f32.s32 %v1119_v45 }
  0x1d   : > { %416 = vmatprep.mubr.f32.mxu0 %v1247_v0  ;;  %440 = vmatprep.mubr.f32.mxu1 %v1247_v0 }
  0x1e   : > { %1156 = vset.pattern.permute.xlu1 %v1249_v17  ;;  %308 = vperm.xlu0 %1154, %v267_v14   ;;  %v1122_v50 = vcvt.f32.s32 %v1121_v47  ;;  %v1426_v52 = vcvt.s32.f32 %v1120_v49 }
  0x1f   : > { %567 = vperm.xlu1 %1156, %v1308_v3  }
  0x20   : > { %1080 = vmatmul.mubr.msk.f32.gmra.mrb[4].mxu0 %vm313_vm1, %v270_v15  ;;  %1084 = vmatmul.mubr.msk.f32.gmra.mrb[4].mxu1 %vm313_vm1, %v274_v16  ;;  %v1431_v54 = vcvt.s32.f32 %v1122_v50  ;;  %v562_v55 = vmul.f32 16.0, %v1426_v52 }
  0x21   : > { %422 = vmatprep.mubr.f32.mxu0 %v1247_v0 }
  0x22   : > { %1157 = vset.pattern.permute.xlu0 %v1249_v17  ;;  %v563_v58 = vmul.f32 16.0, %v1431_v54 }
  0x23   : > { %575 = vperm.xlu1 %1156, %v1302_v2   ;;  %571 = vperm.xlu0 %1157, %v1323_v5  }
  0x24   : > { %1081 = vmatmul.mubr.msk.f32.gmra.mrb[6].mxu0 %vm313_vm1, %v271_v18  ;;  %v1450_v6 = vsub.f32 %v553_v37, %v563_v58 }
  0x27   : > { %579 = vperm.xlu1 %1156, %v1314_v4   ;;  %583 = vperm.xlu0 %1157, %v1341_v11  }
  0x2b   : > { %587 = vperm.xlu1 %1156, %v1336_v10   ;;  %591 = vperm.xlu0 %1157, %v267_v14  }
  0x2f   : > { %1158 = vset.pattern.permute.xlu1 %v1250_v19  ;;  %1159 = vset.pattern.permute.xlu0 %v1250_v19 }
  0x30   : > { %609 = vperm.xlu1 %1158, %v1308_v3   ;;  %613 = vperm.xlu0 %1159, %v1323_v5  }
  0x34   : > { %617 = vperm.xlu1 %1158, %v1302_v2   ;;  %625 = vperm.xlu0 %1159, %v1341_v11  }
  0x38   : > { %621 = vperm.xlu1 %1158, %v1314_v4   ;;  %633 = vperm.xlu0 %1159, %v267_v14  }
  0x3c   : > { %629 = vperm.xlu1 %1158, %v1336_v10   ;;  %1161 = vset.pattern.permute.xlu0 %v1251_v20 }
  0x3d   : > { %739 = vperm.xlu0 %1161, %v1323_v5  }
  0x40   : > { %1160 = vset.pattern.permute.xlu1 %v1251_v20 }
  0x41   : > { %735 = vperm.xlu1 %1160, %v1308_v3   ;;  %751 = vperm.xlu0 %1161, %v1341_v11  }
  0x45   : > { %743 = vperm.xlu1 %1160, %v1302_v2   ;;  %759 = vperm.xlu0 %1161, %v267_v14  }
  0x49   : > { %747 = vperm.xlu1 %1160, %v1314_v4   ;;  %1163 = vset.pattern.permute.xlu0 %v1252_v21 }
  0x4a   : > { %795 = vperm.xlu0 %1163, %v1323_v5  }
  0x4d   : > { %755 = vperm.xlu1 %1160, %v1336_v10  }
  0x4e   : > { %807 = vperm.xlu0 %1163, %v1341_v11  }
  0x51   : > { %1162 = vset.pattern.permute.xlu1 %v1252_v21 }
  0x52   : > { %791 = vperm.xlu1 %1162, %v1308_v3   ;;  %815 = vperm.xlu0 %1163, %v267_v14  }
  0x56   : > { %799 = vperm.xlu1 %1162, %v1302_v2   ;;  %1165 = vset.pattern.permute.xlu0 %v1253_v22 }
  0x57   : > { %865 = vperm.xlu0 %1165, %v1323_v5  }
  0x5a   : > { %803 = vperm.xlu1 %1162, %v1314_v4  }
  0x5b   : > { %877 = vperm.xlu0 %1165, %v1341_v11  }
  0x5e   : > { %811 = vperm.xlu1 %1162, %v1336_v10  }
  0x5f   : > { %885 = vperm.xlu0 %1165, %v267_v14  }
  0x62   : > { %1164 = vset.pattern.permute.xlu1 %v1253_v22 }
  0x63   : > { %861 = vperm.xlu1 %1164, %v1308_v3   ;;  %v1446_v3 = vsub.f32 %v552_v35, %v562_v55 }
  0x67   : > { %869 = vperm.xlu1 %1164, %v1302_v2  }
  0x6b   : > { %873 = vperm.xlu1 %1164, %v1314_v4  }
  0x6f   : > { %881 = vperm.xlu1 %1164, %v1336_v10  }
  0x90   : > { %v1400_v23 = vpop.permute.xlu1 %288  ;;  %v279_v28 = vpop.permute.xlu0 %278 }
  0x94   : > { %v1402_v24 = vpop.permute.xlu1 %293  ;;  %v284_v32 = vpop.permute.xlu0 %283 }
  0x99   : > { %v1404_v25 = vpop.permute.xlu1 %303  ;;  %v299_v36 = vpop.permute.xlu0 %298 }
  0x9d   : > { %v1416_v41 = vpop.permute.xlu0 %308 }
  0x9e   : > { %v1406_v26 = vpop.permute.xlu1 %567 }
  0x9f   : > { %v1460_v18 = vmul.f32 %v1406_v26, %v1446_v3  ;;  %v1468_v22 = vmul.f32 %v1406_v26, %v1450_v6 }
  0xa2   : > { %v1408_v27 = vpop.permute.xlu1 %575  ;;  %v1420_v46 = vpop.permute.xlu0 %571 }
  0xa3   : > { %v1480_v37 = vmul.f32 %v1408_v27, %v1450_v6  ;;  %v596_v42 = vmul.f32 %v1420_v46, %v1446_v3  ;;  %v597_v47 = vmul.f32 %v1420_v46, %v1450_v6 }
  0xa6   : > { %v1410_v30 = vpop.permute.xlu1 %579  ;;  %v1424_v51 = vpop.permute.xlu0 %583 }
  0xa7   : > { %v1498_v55 = vmul.f32 %v1410_v30, %v1450_v6 }
  0xaa   : > { %v1412_v33 = vpop.permute.xlu1 %587  ;;  %v1434_v56 = vpop.permute.xlu0 %591 }
  0xaf   : > { %v1414_v38 = vpop.permute.xlu1 %609  ;;  %v1455_v15 = vpop.permute.xlu0 %613 }
  0xb3   : > { %v1418_v43 = vpop.permute.xlu1 %617  ;;  %v626_v49 = vpop.permute.xlu0 %625 }
  0xb7   : > { %v1422_v48 = vpop.permute.xlu1 %621 }
  0xbb   : > { %v1428_v53 = vpop.permute.xlu1 %629 }
  0xc0   : > { %v1436_v57 = vpop.permute.xlu1 %735 }
  0xc4   : > { %v1462_v19 = vpop.permute.xlu1 %743 }
  0xc8   : > { %v1500_v58 = vpop.permute.xlu1 %747 }
  0xc9   : > { %1827 = vst [vmem:[#allocation2_spill] sm:$0xff] %v1500_v58 }
  0xeb   : > { %v406_v59 = vpop.f32.mrb[0].mxu0  ;;  %v430_v60 = vpop.f32.mrb[0].mxu1 }
  0xec   : > { %v407_v61 = vadd.f32 %v406_v59, %v279_v28  ;;  %v431_v62 = vadd.f32 %v430_v60, %v299_v36  ;;  %v408_v63 = vpop.f32.mrb[1].mxu0  ;;  %v432_v0 = vpop.f32.mrb[1].mxu1  ;;  %v602_v60 = vmul.f32 %v1424_v51, %v1446_v3 }
  0xed   : > { %v409_v1 = vadd.f32 %v408_v63, %v279_v28  ;;  %v433_v2 = vadd.f32 %v432_v0, %v299_v36  ;;  %v1514_v63 = vmul.f32 %v1412_v33, %v1446_v3  ;;  %v1518_v0 = vmul.f32 %v1412_v33, %v1450_v6 }
  0xee   : > { %447 = vst [vmem:[%s1443_s6] sm:$0xff] %v407_v61  ;;  %v1085_v4 = vmul.f32 -1.442695, %v407_v61  ;;  %455 = vst [vmem:[%s1443_s6 + $0x40] sm:$0xff] %v431_v62  ;;  %v1093_v5 = vmul.f32 -1.442695, %v431_v62  ;;  %v1507_v61 = vmul.f32 %v1424_v51, %v1450_v6  ;;  %v636_v51 = vmul.f32 %v1414_v38, %v1426_v52 }
  0xef   : > { %448 = vst [vmem:[%s1443_s6 + $0x8] sm:$0xff] %v409_v1  ;;  %v1086_v7 = vmul.f32 -1.442695, %v409_v1  ;;  %456 = vst [vmem:[%s1443_s6 + $0x48] sm:$0xff] %v433_v2  ;;  %v1094_v8 = vmul.f32 -1.442695, %v433_v2  ;;  %v637_v33 = vmul.f32 %v1414_v38, %v1431_v54  ;;  %v640_v38 = vmul.f32 %v1418_v43, %v1426_v52 }
  0xf0   : > { %v412_v9 = vpop.f32.mrb[2].mxu0  ;;  %v436_v10 = vpop.f32.mrb[2].mxu1  ;;  %1167 = vpow2.f32 %v1085_v4 }
  0xf1   : > { %v413_v11 = vadd.f32 %v412_v9, %v284_v32  ;;  %v437_v12 = vadd.f32 %v436_v10, %v1404_v25  ;;  %v414_v13 = vpop.f32.mrb[3].mxu0  ;;  %v438_v14 = vpop.f32.mrb[3].mxu1  ;;  %1169 = vpow2.f32 %v1093_v5  ;;  %v1535_v10 = vmul.f32 %v1434_v56, %v1450_v6 }
  0xf2   : > { %v415_v16 = vadd.f32 %v414_v13, %v284_v32  ;;  %v439_v17 = vadd.f32 %v438_v14, %v1404_v25  ;;  %1171 = vpow2.f32 %v1086_v7  ;;  %v1474_v32 = vmul.f32 %v1408_v27, %v1446_v3 }
  0xf3   : > { %449 = vst [vmem:[%s1443_s6 + $0x10] sm:$0xff] %v413_v11  ;;  %v1087_v20 = vmul.f32 -1.442695, %v413_v11  ;;  %457 = vst [vmem:[%s1443_s6 + $0x50] sm:$0xff] %v437_v12  ;;  %v1095_v21 = vmul.f32 -1.442695, %v437_v12  ;;  %1173 = vpow2.f32 %v1094_v8  ;;  %v638_v7 = vmul.f32 %v1455_v15, %v1426_v52  ;;  %v634_v11 = vpop.permute.xlu0 %633 }
  0xf4   : > { %450 = vst [vmem:[%s1443_s6 + $0x18] sm:$0xff] %v415_v16  ;;  %v1088_v28 = vmul.f32 -1.442695, %v415_v16  ;;  %458 = vst [vmem:[%s1443_s6 + $0x58] sm:$0xff] %v439_v17  ;;  %v1096_v25 = vmul.f32 -1.442695, %v439_v17  ;;  %v641_v14 = vmul.f32 %v1418_v43, %v1431_v54  ;;  %v1543_v17 = vpop.permute.xlu1 %755  ;;  %v644_v6 = vmul.f32 %v626_v49, %v1426_v52 }
  0xf5   : > { %v418_v29 = vpop.f32.mrb[4].mxu0  ;;  %v442_v31 = vpop.f32.mrb[4].mxu1  ;;  %1175 = vpow2.f32 %v1087_v20 }
  0xf6   : > { %v419_v34 = vadd.f32 %v418_v29, %v1400_v23  ;;  %v443_v35 = vadd.f32 %v442_v31, %v1416_v41  ;;  %v420_v26 = vpop.f32.mrb[5].mxu0  ;;  %v444_v36 = vpop.f32.mrb[5].mxu1  ;;  %1177 = vpow2.f32 %v1095_v21 }
  0xf7   : > { %v421_v39 = vadd.f32 %v420_v26, %v1400_v23  ;;  %v445_v40 = vadd.f32 %v444_v36, %v1416_v41  ;;  %1179 = vpow2.f32 %v1088_v28  ;;  %v424_v23 = vpop.f32.mrb[6].mxu0  ;;  %v1494_v41 = vmul.f32 %v1410_v30, %v1446_v3 }
  0xf8   : > { %451 = vst [vmem:[%s1443_s6 + $0x20] sm:$0xff] %v419_v34  ;;  %v1089_v44 = vmul.f32 -1.442695, %v419_v34  ;;  %459 = vst [vmem:[%s1443_s6 + $0x60] sm:$0x3f] %v443_v35  ;;  %1181 = vpow2.f32 %v1096_v25  ;;  %v425_v46 = vadd.f32 %v424_v23, %v1402_v24  ;;  %v426_v59 = vpop.f32.mrb[7].mxu0  ;;  %v1550_v28 = vadd.f32 %v637_v33, %v1468_v22 }
  0xf9   : > { %v1097_v45 = vmul.f32 -1.442695, %v443_v35  ;;  %452 = vst [vmem:[%s1443_s6 + $0x28] sm:$0xff] %v421_v39  ;;  %v1090_v27 = vmul.f32 -1.442695, %v421_v39  ;;  %v1510_v62 = vadd.f32 %v426_v59, %v1402_v24  ;;  %v1525_v24 = vmul.f32 %v1434_v56, %v1446_v3  ;;  %v1557_v35 = vpop.permute.xlu0 %739 }
  0xfa   : > { %460 = vst [vmem:[%s1443_s6 + $0x68] sm:$0x3f] %v445_v40  ;;  %v1098_v50 = vmul.f32 -1.442695, %v445_v40  ;;  %1183 = vpow2.f32 %v1089_v44  ;;  %v1168_v30 = vpop.eup %1167  ;;  %453 = vst [vmem:[%s1443_s6 + $0x30] sm:$0xff] %v425_v46  ;;  %v639_v3 = vmul.f32 %v1455_v15, %v1431_v54  ;;  %v1546_v56 = vadd.f32 %v636_v51, %v1460_v18 }
  0xfb   : > { %1185 = vpow2.f32 %v1097_v45  ;;  %v1091_v1 = vmul.f32 -1.442695, %v425_v46  ;;  %v1170_v2 = vpop.eup %1169  ;;  %v503_v4 = vadd.f32 1.0, %v1168_v30  ;;  %454 = vst [vmem:[%s1443_s6 + $0x38] sm:$0xff] %v1510_v62  ;;  %v1552_v25 = vadd.f32 %v638_v7, %v596_v42 }
  0xfc   : > { %1187 = vpow2.f32 %v1090_v27  ;;  %v1172_v5 = vpop.eup %1171  ;;  %v511_v8 = vadd.f32 1.0, %v1170_v2  ;;  %v1554_v31 = vadd.f32 %v639_v3, %v597_v47  ;;  %v645_v34 = vmul.f32 %v626_v49, %v1431_v54 }
  0xfd   : > { %1189 = vpow2.f32 %v1098_v50  ;;  %v1174_v9 = vpop.eup %1173  ;;  %v504_v12 = vadd.f32 1.0, %v1172_v5  ;;  %v1560_v36 = vadd.f32 %v640_v38, %v1474_v32  ;;  %v1563_v22 = vadd.f32 %v641_v14, %v1480_v37  ;;  %v1572_v37 = vpop.permute.xlu1 %791 }
  0xfe   : > { %1191 = vpow2.f32 %v1091_v1  ;;  %v512_v16 = vadd.f32 1.0, %v1174_v9  ;;  %v642_v42 = vmul.f32 %v1422_v48, %v1426_v52  ;;  %v1567_v44 = vadd.f32 %v644_v6, %v602_v60 }
  0xff   : > { %1193 = vrcp.f32 %v503_v4  ;;  %v1176_v13 = vpop.eup %1175  ;;  %v643_v49 = vmul.f32 %v1422_v48, %v1431_v54  ;;  %v648_v32 = vmul.f32 %v634_v11, %v1426_v52  ;;  %v646_v23 = vmul.f32 %v1428_v53, %v1426_v52  ;;  %v752_v52 = vpop.permute.xlu0 %751 }
 0x100   : > { %1195 = vrcp.f32 %v511_v8  ;;  %v1178_v20 = vpop.eup %1177  ;;  %v505_v15 = vadd.f32 1.0, %v1176_v13  ;;  %v649_v46 = vmul.f32 %v634_v11, %v1431_v54  ;;  %v647_v30 = vmul.f32 %v1428_v53, %v1431_v54 }
 0x101   : > { %1197 = vrcp.f32 %v504_v12  ;;  %v1180_v21 = vpop.eup %1179  ;;  %v513_v43 = vadd.f32 1.0, %v1178_v20  ;;  %v1092_v1 = vmul.f32 -1.442695, %v1510_v62  ;;  %v1583_v51 = vadd.f32 %v642_v42, %v1494_v41  ;;  %v1612_v11 = vpop.permute.xlu1 %799 }
 0x102   : > { %1199 = vrcp.f32 %v512_v16  ;;  %v1182_v29 = vpop.eup %1181  ;;  %v506_v18 = vadd.f32 1.0, %v1180_v21  ;;  %v1586_v4 = vadd.f32 %v645_v34, %v1507_v61  ;;  %v1591_v7 = vadd.f32 %v643_v49, %v1498_v55 }
 0x103   : > { %1201 = vrcp.f32 %v505_v15  ;;  %v514_v39 = vadd.f32 1.0, %v1182_v29  ;;  %v1594_v53 = vadd.f32 %v648_v32, %v1525_v24  ;;  %v1600_v41 = vadd.f32 %v646_v23, %v1514_v63 }
 0x104   : > { %v1184_v26 = vpop.eup %1183  ;;  %1203 = vrcp.f32 %v513_v43  ;;  %v1603_v61 = vadd.f32 %v649_v46, %v1535_v10  ;;  %v1609_v55 = vadd.f32 %v647_v30, %v1518_v0 }
 0x105   : > { %v1186_v40 = vpop.eup %1185  ;;  %1205 = vrcp.f32 %v506_v18  ;;  %v507_v45 = vadd.f32 1.0, %v1184_v26  ;;  %v760_v18 = vpop.permute.xlu0 %759 }
 0x106   : > { %v1188_v47 = vpop.eup %1187  ;;  %1207 = vrcp.f32 %v514_v39  ;;  %v515_v27 = vadd.f32 1.0, %v1186_v40  ;;  %v1646_v30 = vpop.permute.xlu1 %803 }
 0x107   : > { %v1190_v50 = vpop.eup %1189  ;;  %1209 = vrcp.f32 %v507_v45  ;;  %v508_v59 = vadd.f32 1.0, %v1188_v47 }
 0x108   : > { %v1192_v60 = vpop.eup %1191  ;;  %1211 = vrcp.f32 %v515_v27  ;;  %v516_v48 = vadd.f32 1.0, %v1190_v50 }
 0x109   : > { %v1580_v2 = vpop.eup %1193  ;;  %1213 = vrcp.f32 %v508_v59  ;;  %v509_v5 = vadd.f32 1.0, %v1192_v60 }
 0x10a   : > { %v1588_v33 = vpop.eup %1195  ;;  %1215 = vrcp.f32 %v516_v48  ;;  %v664_v54 = vmul.f32 2.0, %v1580_v2 }
 0x10b   : > { %v1597_v62 = vpop.eup %1197  ;;  %v672_v8 = vmul.f32 2.0, %v1588_v33  ;;  %1217 = vrcp.f32 %v509_v5 }
 0x10c   : > { %v1606_v9 = vpop.eup %1199  ;;  %v665_v24 = vmul.f32 2.0, %v1597_v62  ;;  %v1099_v3 = vadd.f32 -0.5, %v664_v54  ;;  %1219 = vpow2.f32 %v1092_v1  ;;  %v1619_v38 = vmul.f32 %v664_v54, %v664_v54 }
 0x10d   : > { %v1614_v12 = vpop.eup %1201  ;;  %v673_v63 = vmul.f32 2.0, %v1606_v9  ;;  %v1617_v10 = vadd.f32 -0.5, %v672_v8  ;;  %v728_v13 = vmul.f32 %v672_v8, %v672_v8 }
 0x10e   : > { %v1621_v14 = vpop.eup %1203  ;;  %v666_v0 = vmul.f32 2.0, %v1614_v12  ;;  %v1100_v16 = vadd.f32 -0.5, %v665_v24  ;;  %v692_v20 = vadd.f32 %v1099_v3, %v1546_v56  ;;  %v1625_v6 = vmul.f32 %v665_v24, %v665_v24 }
 0x10f   : > { %v1627_v15 = vpop.eup %1205  ;;  %v674_v21 = vmul.f32 2.0, %v1621_v14  ;;  %v1630_v43 = vadd.f32 -0.5, %v673_v63  ;;  %v729_v29 = vmul.f32 %v673_v63, %v673_v63  ;;  %v1632_v34 = vmul.f32 %v752_v52, %v728_v13 }
 0x110   : > { %v1634_v26 = vpop.eup %1207  ;;  %v667_v39 = vmul.f32 2.0, %v1627_v15  ;;  %v1101_v40 = vadd.f32 -0.5, %v666_v0  ;;  %v722_v42 = vmul.f32 %v666_v0, %v666_v0  ;;  %v693_v56 = vadd.f32 %v1100_v16, %v1550_v28 }
 0x111   : > { %1828 = vst [vmem:[#allocation3_spill] sm:$0xff] %v1632_v34  ;;  %v1638_v45 = vpop.eup %1209  ;;  %v675_v47 = vmul.f32 2.0, %v1634_v26  ;;  %v1109_v49 = vadd.f32 -0.5, %v674_v21  ;;  %v730_v32 = vmul.f32 %v674_v21, %v674_v21  ;;  %v706_v27 = vmul.f32 8.0, %v692_v20 }
 0x112   : > { %v1641_v50 = vpop.eup %1211  ;;  %v1102_v23 = vadd.f32 -0.5, %v667_v39  ;;  %v723_v46 = vmul.f32 %v667_v39, %v667_v39  ;;  %v1644_v59 = vmul.f32 %v1557_v35, %v722_v42  ;;  %v707_v60 = vmul.f32 8.0, %v693_v56  ;;  %v796_v39 = vpop.permute.xlu0 %795 }
 0x113   : > { %v1648_v48 = vpop.eup %1213  ;;  %v1110_v28 = vadd.f32 -0.5, %v675_v47  ;;  %v731_v1 = vmul.f32 %v675_v47, %v675_v47  ;;  %v1651_v5 = vmul.f32 %v1543_v17, %v730_v32  ;;  %v776_v54 = vsub.f32 %v706_v27, %v1580_v2 }
 0x114   : > { %v1654_v8 = vpop.eup %1215  ;;  %v1657_v24 = vmul.f32 %v1557_v35, %v723_v46  ;;  %v777_v3 = vsub.f32 %v707_v60, %v1597_v62  ;;  %v1660_v63 = vmul.f32 %v752_v52, %v729_v29  ;;  %v1663_v13 = vmul.f32 2.0, %v1638_v45 }
 0x115   : > { %1829 = vst [vmem:[#allocation4_spill] sm:$0xff] %v1651_v5  ;;  %v1665_v0 = vpop.eup %1217  ;;  %v1668_v16 = vmul.f32 %v1543_v17, %v731_v1  ;;  %v818_v20 = vmul.f32 %v1572_v37, %v776_v54  ;;  %v1672_v21 = vmul.f32 2.0, %v1648_v48  ;;  %v676_v35 = vmul.f32 2.0, %v1641_v50 }
 0x116   : > { %1830 = vst [vmem:[#allocation5_spill] sm:$0xff] %v1657_v24  ;;  %1831 = vst [vmem:[#allocation6_spill] sm:$0xff] %v1660_v63  ;;  %v1220_v42 = vpop.eup %1219  ;;  %v819_v52 = vmul.f32 %v1572_v37, %v777_v3  ;;  %v1103_v29 = vadd.f32 -0.5, %v1663_v13  ;;  %v677_v56 = vmul.f32 2.0, %v1654_v8  ;;  %v1679_v47 = vmul.f32 2.0, %v1665_v0  ;;  %v812_v3 = vpop.permute.xlu1 %811 }
 0x117   : > { %1832 = vst [vmem:[#allocation7_spill] sm:$0xff] %v1668_v16  ;;  %v1682_v17 = vadd.f32 %v1580_v2, %v818_v20  ;;  %v510_v32 = vadd.f32 1.0, %v1220_v42  ;;  %v1104_v27 = vadd.f32 -0.5, %v1672_v21  ;;  %v1111_v46 = vadd.f32 -0.5, %v676_v35 }
 0x118   : > { %v1686_v60 = vadd.f32 %v1597_v62, %v819_v52  ;;  %v696_v1 = vadd.f32 %v1103_v29, %v1560_v36  ;;  %v1112_v37 = vadd.f32 -0.5, %v677_v56  ;;  %v732_v54 = vmul.f32 %v676_v35, %v676_v35  ;;  %v808_v29 = vpop.permute.xlu0 %807 }
 0x119   : > { %1221 = vrcp.f32 %v510_v32  ;;  %v697_v16 = vadd.f32 %v1104_v27, %v1563_v22  ;;  %v733_v5 = vmul.f32 %v677_v56, %v677_v56  ;;  %v1105_v63 = vadd.f32 -0.5, %v1679_v47 }
 0x11a   : > { %v710_v20 = vmul.f32 8.0, %v696_v1  ;;  %v1691_v34 = vmul.f32 %v760_v18, %v732_v54  ;;  %v694_v42 = vadd.f32 %v1101_v40, %v1552_v25  ;;  %v695_v58 = vadd.f32 %v1102_v23, %v1554_v31 }
 0x11b   : > { %v711_v52 = vmul.f32 8.0, %v697_v16  ;;  %v1695_v24 = vmul.f32 %v760_v18, %v733_v5  ;;  %v698_v36 = vadd.f32 %v1105_v63, %v1583_v51  ;;  %v702_v35 = vadd.f32 %v1109_v49, %v1600_v41  ;;  %v862_v49 = vpop.permute.xlu1 %861 }
 0x11c   : > { %v780_v22 = vsub.f32 %v710_v20, %v1638_v45  ;;  %v708_v56 = vmul.f32 8.0, %v694_v42  ;;  %v709_v32 = vmul.f32 8.0, %v695_v58  ;;  %v703_v27 = vadd.f32 %v1110_v28, %v1609_v55 }
 0x11d   : > { %v781_v1 = vsub.f32 %v711_v52, %v1648_v48  ;;  %v712_v54 = vmul.f32 8.0, %v698_v36  ;;  %v716_v25 = vmul.f32 8.0, %v702_v35  ;;  %v700_v31 = vadd.f32 %v1617_v10, %v1567_v44  ;;  %v816_v52 = vpop.permute.xlu0 %815 }
 0x11e   : > { %v822_v18 = vmul.f32 %v1612_v11, %v780_v22  ;;  %v778_v51 = vsub.f32 %v708_v56, %v1614_v12  ;;  %v779_v41 = vsub.f32 %v709_v32, %v1627_v15  ;;  %v717_v40 = vmul.f32 8.0, %v703_v27 }
 0x11f   : > { %v823_v23 = vmul.f32 %v1612_v11, %v781_v1  ;;  %v782_v58 = vsub.f32 %v712_v54, %v1665_v0  ;;  %v786_v55 = vsub.f32 %v716_v25, %v1621_v14  ;;  %v701_v28 = vadd.f32 %v1630_v43, %v1586_v4 }
 0x120   : > { %v1713_v5 = vadd.f32 %v1638_v45, %v822_v18  ;;  %v820_v44 = vmul.f32 %v796_v39, %v778_v51  ;;  %v821_v10 = vmul.f32 %v796_v39, %v779_v41  ;;  %v787_v63 = vsub.f32 %v717_v40, %v1634_v26 }
 0x121   : > { %v1717_v16 = vadd.f32 %v1648_v48, %v823_v23  ;;  %v824_v20 = vmul.f32 %v1646_v30, %v782_v58  ;;  %v828_v11 = vmul.f32 %v812_v3, %v786_v55  ;;  %v714_v42 = vmul.f32 8.0, %v700_v31  ;;  %v870_v31 = vpop.permute.xlu1 %869 }
 0x122   : > { %v834_v36 = vadd.f32 %v1614_v12, %v820_v44  ;;  %v835_v35 = vadd.f32 %v1627_v15, %v821_v10  ;;  %v829_v4 = vmul.f32 %v812_v3, %v787_v63  ;;  %v715_v43 = vmul.f32 8.0, %v701_v28 }
 0x123   : > { %v1722_v22 = vpop.eup %1221  ;;  %v1725_v39 = vadd.f32 %v1665_v0, %v824_v20  ;;  %v1728_v56 = vadd.f32 %v1621_v14, %v828_v11  ;;  %v784_v32 = vsub.f32 %v714_v42, %v1588_v33  ;;  %v762_v27 = vmul.f32 %v1436_v57, %v1619_v38 }
 0x124   : > { %v671_v1 = vmul.f32 2.0, %v1722_v22  ;;  %v1735_v54 = vadd.f32 %v1634_v26, %v829_v4  ;;  %v785_v3 = vsub.f32 %v715_v43, %v1606_v9  ;;  %v763_v25 = vmul.f32 %v1436_v57, %v1625_v6  ;;  %v866_v6 = vpop.permute.xlu0 %865  ;;  %v1833_v4 = vld [vmem:[#allocation5_spill] sm:$0xff] }
 0x125   : > { %v826_v18 = vmul.f32 %v808_v29, %v784_v32  ;;  %v846_v51 = vsub.f32 %v762_v27, %v1580_v2  ;;  %v704_v41 = vadd.f32 %v1111_v46, %v1594_v53  ;;  %v705_v40 = vadd.f32 %v1112_v37, %v1603_v61  ;;  %v874_v11 = vpop.permute.xlu1 %873 }
 0x126   : > { %v1106_v38 = vadd.f32 -0.5, %v671_v1  ;;  %v827_v23 = vmul.f32 %v808_v29, %v785_v3  ;;  %v847_v58 = vsub.f32 %v763_v25, %v1597_v62  ;;  %v724_v55 = vmul.f32 %v1663_v13, %v1663_v13 }
 0x127   : > { %v840_v28 = vadd.f32 %v1588_v33, %v826_v18  ;;  %v888_v44 = vmul.f32 %v862_v49, %v846_v51  ;;  %v718_v10 = vmul.f32 8.0, %v704_v41  ;;  %v719_v57 = vmul.f32 8.0, %v705_v40  ;;  %v1834_v40 = vld [vmem:[#allocation2_spill] sm:$0xff] }
 0x128   : > { %v699_v2 = vadd.f32 %v1106_v38, %v1591_v7  ;;  %v841_v53 = vadd.f32 %v1606_v9, %v827_v23  ;;  %v889_v62 = vmul.f32 %v862_v49, %v847_v58  ;;  %v725_v61 = vmul.f32 %v1672_v21, %v1672_v21  ;;  %v1835_v38 = vld [vmem:[#allocation3_spill] sm:$0xff] }
 0x129   : > { %v902_v13 = vadd.f32 %v888_v44, %v1682_v17  ;;  %v788_v46 = vsub.f32 %v718_v10, %v1641_v50  ;;  %v789_v37 = vsub.f32 %v719_v57, %v1654_v8  ;;  %v766_v29 = vmul.f32 %v1462_v19, %v724_v55 }
 0x12a   : > { %v713_v63 = vmul.f32 8.0, %v699_v2  ;;  %v903_v20 = vadd.f32 %v889_v62, %v1686_v60  ;;  %v767_v7 = vmul.f32 %v1462_v19, %v725_v61  ;;  %v848_v49 = vsub.f32 %v1644_v59, %v1614_v12 }
 0x12b   : > { %916 = vst [vmem:[%s1752_s9] sm:$0xff] %v902_v13  ;;  %v830_v21 = vmul.f32 %v816_v52, %v788_v46  ;;  %v831_v42 = vmul.f32 %v816_v52, %v789_v37  ;;  %v850_v17 = vsub.f32 %v766_v29, %v1638_v45  ;;  %v849_v43 = vsub.f32 %v1833_v4, %v1627_v15  ;;  %v878_v45 = vpop.permute.xlu0 %877 }
 0x12c   : > { %v783_v32 = vsub.f32 %v713_v63, %v1722_v22  ;;  %917 = vst [vmem:[%s1752_s9 + $0x8] sm:$0xff] %v903_v20  ;;  %v851_v27 = vsub.f32 %v767_v7, %v1648_v48  ;;  %v890_v60 = vmul.f32 %v866_v6, %v848_v49  ;;  %v726_v19 = vmul.f32 %v1679_v47, %v1679_v47 }
 0x12d   : > { %v844_v12 = vadd.f32 %v1641_v50, %v830_v21  ;;  %v845_v59 = vadd.f32 %v1654_v8, %v831_v42  ;;  %v892_v52 = vmul.f32 %v870_v31, %v850_v17  ;;  %v891_v3 = vmul.f32 %v866_v6, %v849_v43 }
 0x12e   : > { %v825_v15 = vmul.f32 %v1646_v30, %v783_v32  ;;  %v893_v25 = vmul.f32 %v870_v31, %v851_v27  ;;  %v904_v18 = vadd.f32 %v890_v60, %v834_v36  ;;  %v727_v51 = vmul.f32 %v671_v1, %v671_v1  ;;  %v1836_v30 = vld [vmem:[#allocation6_spill] sm:$0xff]  ;;  %v882_v1 = vpop.permute.xlu1 %881  ;;  %v1837_v31 = vld [vmem:[#allocation4_spill] sm:$0xff] }
 0x12f   : > { %v906_v48 = vadd.f32 %v892_v52, %v1713_v5  ;;  %v905_v41 = vadd.f32 %v891_v3, %v835_v35  ;;  %v768_v47 = vmul.f32 %v1834_v40, %v726_v19  ;;  %v854_v23 = vsub.f32 %v1835_v38, %v1588_v33  ;;  %v1838_v33 = vld [vmem:[#allocation7_spill] sm:$0xff] }
 0x130   : > { %v839_v58 = vadd.f32 %v1722_v22, %v825_v15  ;;  %v907_v55 = vadd.f32 %v893_v25, %v1717_v16  ;;  %918 = vst [vmem:[%s1752_s9 + $0x10] sm:$0xff] %v904_v18  ;;  %v769_v44 = vmul.f32 %v1834_v40, %v727_v51  ;;  %v855_v36 = vsub.f32 %v1836_v30, %v1606_v9  ;;  %v886_v16 = vpop.permute.xlu0 %885 }
 0x131   : > { %920 = vst [vmem:[%s1752_s9 + $0x20] sm:$0xff] %v906_v48  ;;  %919 = vst [vmem:[%s1752_s9 + $0x18] sm:$0xff] %v905_v41  ;;  %v852_v5 = vsub.f32 %v768_v47, %v1665_v0  ;;  %v896_v35 = vmul.f32 %v878_v45, %v854_v23  ;;  %v856_v10 = vsub.f32 %v1837_v31, %v1621_v14 }
 0x132   : > { %v857_v57 = vsub.f32 %v1838_v33, %v1634_v26  ;;  %921 = vst [vmem:[%s1752_s9 + $0x28] sm:$0xff] %v907_v55  ;;  %v853_v6 = vsub.f32 %v769_v44, %v1722_v22  ;;  %v897_v2 = vmul.f32 %v878_v45, %v855_v36  ;;  %v858_v9 = vsub.f32 %v1691_v34, %v1641_v50 }
 0x133   : > { %v859_v0 = vsub.f32 %v1695_v24, %v1654_v8  ;;  %v894_v62 = vmul.f32 %v874_v11, %v852_v5  ;;  %v910_v61 = vadd.f32 %v896_v35, %v840_v28  ;;  %v898_v14 = vmul.f32 %v882_v1, %v856_v10 }
 0x134   : > { %v899_v26 = vmul.f32 %v882_v1, %v857_v57  ;;  %v895_v13 = vmul.f32 %v874_v11, %v853_v6  ;;  %v911_v46 = vadd.f32 %v897_v2, %v841_v53  ;;  %v900_v22 = vmul.f32 %v886_v16, %v858_v9 }
 0x135   : > { %v901_v37 = vmul.f32 %v886_v16, %v859_v0  ;;  %v908_v29 = vadd.f32 %v894_v62, %v1725_v39  ;;  %924 = vst [vmem:[%s1752_s9 + $0x40] sm:$0xff] %v910_v61  ;;  %v912_v34 = vadd.f32 %v898_v14, %v1728_v56 }
 0x136   : > { %v913_v50 = vadd.f32 %v899_v26, %v1735_v54  ;;  %v909_v8 = vadd.f32 %v895_v13, %v839_v58  ;;  %925 = vst [vmem:[%s1752_s9 + $0x48] sm:$0xff] %v911_v46  ;;  %v914_v24 = vadd.f32 %v900_v22, %v844_v12 }
 0x137   : > { %v915_v28 = vadd.f32 %v901_v37, %v845_v59  ;;  %922 = vst [vmem:[%s1752_s9 + $0x30] sm:$0xff] %v908_v29  ;;  %926 = vst [vmem:[%s1752_s9 + $0x50] sm:$0xff] %v912_v34 }
 0x138   : > { %927 = vst [vmem:[%s1752_s9 + $0x58] sm:$0xff] %v913_v50  ;;  %923 = vst [vmem:[%s1752_s9 + $0x38] sm:$0xff] %v909_v8 }
 0x139   : > { %928 = vst [vmem:[%s1752_s9 + $0x60] sm:$0x3f] %v914_v24  ;;  %929 = vst [vmem:[%s1752_s9 + $0x68] sm:$0x3f] %v915_v28 }
 0x13a PF: > { %s15_s17 = sadd.s32 1, %s1245_s17   ;;  %s1839_s15 = smov %s1241_s16 }
 0x13b   : > { %p12_p5 = scmp.ge.s32.totalorder %s15_s17, 4   ;;  %s1840_s16 = smov %s1842_s18 }
 0x13d   :  { %14 = sbr.rel (!%p12_p5) target bundleno = 2 (0x2), region = 74 }

</bundles_post_ra>
